<compile_context>
chip_gen: v5e
topology: v5e:2x2
jax: 0.10.0
libtpu: 0.0.40
codegen_flags: <defaults>
</compile_context>

<pallas_src>
import functools

import jax
import jax.numpy as jnp
from jax.experimental import pallas as pl
from jax.experimental.pallas import tpu as pltpu


_HID = 128       # packed hidden lane width (both heads side-by-side, padded to a full vreg)
_ATOM_PAD = 128  # padded atoms per head (full vreg -> unmasked softmax reductions)


def _round_up(x, m):
    return ((x + m - 1) // m) * m


# --------------------------------------------------------------------------- #
# Kernel
# --------------------------------------------------------------------------- #
def _mish(x):
    # mish(x) = x * tanh(softplus(x)).  With t = e^x:
    #   tanh(log(1 + t)) = (t^2 + 2t) / (t^2 + 2t + 2)
    # Exponent clamped at 20 (mish(x) ~= x there).  EUP approx reciprocal keeps
    # this off the VALU; validated well within test tolerance.
    t = jnp.exp(jnp.minimum(x, 20.0))
    u = t * (t + 2.0)
    return x * u * pl.reciprocal(u + 2.0, approx=True)


def _softmax_lastdim(logits):
    # Exact divide for the final normalization (rows must sum to 1 for C51 use).
    m = jnp.max(logits, axis=-1, keepdims=True)
    e = jnp.exp(logits - m)
    return e / jnp.sum(e, axis=-1, keepdims=True)


def _critic_kernel(x_ref, w_ref, b_ref, out_ref):
    """Fused two-head C51 critic forward.

    x_ref   : [Bp, K1p]            f32   concat(state, action), zero-padded
    w_ref   : [K1p + 4*HID, HID]   bf16  packed weights (W1 | W2 | W3 | W4_q1 | W4_q2)
    b_ref   : [5, Bp, HID]         f32   pre-broadcast biases (padded atom lanes = -1e30)
    out_ref : [2, Bp, HID]         f32   per-head softmax distributions
    """
    k1p = x_ref.shape[1]
    hid = w_ref.shape[1]
    r1, r2, r3, r4 = k1p, k1p + hid, k1p + 2 * hid, k1p + 3 * hid

    f32 = jnp.float32
    bf16 = jnp.bfloat16

    # Layer 1 (single matmul; both heads packed along lanes).
    x = x_ref[...].astype(bf16)
    h = jnp.dot(x, w_ref[0:r1, :], preferred_element_type=f32) + b_ref[0]
    h = _mish(h)
    # Layers 2 / 3 (block-diagonal packed weights -> one matmul per layer).
    h = jnp.dot(h.astype(bf16), w_ref[r1:r2, :], preferred_element_type=f32) + b_ref[1]
    h = _mish(h)
    h = jnp.dot(h.astype(bf16), w_ref[r2:r3, :], preferred_element_type=f32) + b_ref[2]
    h = _mish(h)
    # Layer 4: one 128-lane logits vreg per head (padded atoms get -1e30 bias).
    hb = h.astype(bf16)
    logits1 = jnp.dot(hb, w_ref[r3:r4, :], preferred_element_type=f32) + b_ref[3]
    logits2 = jnp.dot(hb, w_ref[r4:, :], preferred_element_type=f32) + b_ref[4]

    # Direct per-head stores: no epilogue lane concatenation.
    out_ref[0] = _softmax_lastdim(logits1)
    out_ref[1] = _softmax_lastdim(logits2)


# --------------------------------------------------------------------------- #
# Wrapper
# --------------------------------------------------------------------------- #
@functools.partial(jax.jit, static_argnames=("num_atoms",))
def critic_forward(state, action, packed_params, num_atoms=51):
    w_slab, b_slab = packed_params
    batch = state.shape[0]
    bp = b_slab.shape[1]
    hid = w_slab.shape[1]
    k1p = w_slab.shape[0] - 4 * hid

    # Host-side concat + pad: trivial XLA fusion; keeps layer 1 to a single matmul.
    x = jnp.concatenate([state, action], axis=-1).astype(jnp.float32)
    x = jnp.pad(x, ((0, bp - batch), (0, k1p - x.shape[1])))

    flops = 2 * bp * hid * (k1p + 4 * hid)
    transcendentals = 5 * bp * hid
    bytes_accessed = (x.size * 4 + w_slab.size * 2 + b_slab.size * 4
                      + 2 * bp * hid * 4)

    vmem = pl.BlockSpec(memory_space=pltpu.MemorySpace.VMEM)
    dist = pl.pallas_call(
        _critic_kernel,
        out_shape=jax.ShapeDtypeStruct((2, bp, hid), jnp.float32),
        in_specs=[vmem, vmem, vmem],
        out_specs=vmem,
        cost_estimate=pl.CostEstimate(
            flops=flops,
            transcendentals=transcendentals,
            bytes_accessed=bytes_accessed),
    )(x, w_slab, b_slab)

    q1_dist = dist[0, :batch, :num_atoms]
    q2_dist = dist[1, :batch, :num_atoms]
    return q1_dist, q2_dist


# --------------------------------------------------------------------------- #
# Parameter packing (one-time host-side preprocessing)
# --------------------------------------------------------------------------- #
def pack_critic_params(q1_params, q2_params, batch):
    (q1_w1, q1_b1, q1_w2, q1_b2, q1_w3, q1_b3, q1_w4, q1_b4) = q1_params
    (q2_w1, q2_b1, q2_w2, q2_b2, q2_w3, q2_b3, q2_w4, q2_b4) = q2_params

    in_dim = q1_w1.shape[0]
    hdim = q1_w2.shape[0]
    num_atoms = q1_w4.shape[1]
    assert 2 * hdim <= _HID and num_atoms <= _ATOM_PAD

    k1p = _round_up(in_dim, 16)     # bf16 sublane-tile aligned W-slab row offsets
    bp = _round_up(batch, 8)

    def pad_to(mat, rows, cols):
        r, c = mat.shape
        return jnp.pad(mat, ((0, rows - r), (0, cols - c)))

    # W1: both heads read the full (state, action) input -> lane-concat.
    w1 = pad_to(jnp.concatenate([q1_w1, q2_w1], axis=1), k1p, _HID)

    # W2 / W3: block-diagonal so one matmul serves both heads.
    def bd(a, b):
        z = jnp.zeros((hdim, hdim), jnp.float32)
        return jnp.concatenate([jnp.concatenate([a, z], axis=1),
                                jnp.concatenate([z, b], axis=1)], axis=0)
    w2 = pad_to(bd(q1_w2, q2_w2), _HID, _HID)
    w3 = pad_to(bd(q1_w3, q2_w3), _HID, _HID)

    # W4: one 128-lane block per head; padded atoms get zero weight.
    w4a = jnp.zeros((_HID, _ATOM_PAD), jnp.float32).at[0:hdim, 0:num_atoms].set(q1_w4)
    w4b = jnp.zeros((_HID, _ATOM_PAD), jnp.float32).at[hdim:2 * hdim, 0:num_atoms].set(q2_w4)

    w_slab = jnp.concatenate([w1, w2, w3, w4a, w4b], axis=0).astype(jnp.bfloat16)

    # Biases (f32, pre-broadcast to Bp rows; padded atom lanes = -1e30 so softmax -> 0).
    def b_hidden(b1, b2):
        row = jnp.concatenate([b1, b2], axis=1)                     # [1, 2H]
        row = jnp.pad(row, ((0, 0), (0, _HID - 2 * hdim)))          # [1, HID]
        return jnp.broadcast_to(row, (bp, _HID))

    def b_out(b):
        row = jnp.pad(b, ((0, 0), (0, _ATOM_PAD - num_atoms)),
                      constant_values=-1e30)                        # [1, ATOM_PAD]
        return jnp.broadcast_to(row, (bp, _ATOM_PAD))

    b_slab = jnp.stack([b_hidden(q1_b1, q2_b1),
                        b_hidden(q1_b2, q2_b2),
                        b_hidden(q1_b3, q2_b3),
                        b_out(q1_b4),
                        b_out(q2_b4)]).astype(jnp.float32)          # [5, Bp, HID]

    return w_slab, b_slab


# --------------------------------------------------------------------------- #
# Reference init / model (PyTorch-equivalent semantics, pure JAX, for checking)
# --------------------------------------------------------------------------- #
def _init_linear(key, fan_in, fan_out):
    """Mimic PyTorch nn.Linear default init (uniform +/- 1/sqrt(fan_in))."""
    kw, kb = jax.random.split(key)
    bound = 1.0 / jnp.sqrt(jnp.float32(fan_in))
    # weight stored as [in, out] so the kernel does x @ w  (== PyTorch x @ W.T)
    w = jax.random.uniform(kw, (fan_in, fan_out), jnp.float32, -bound, bound)
    b = jax.random.uniform(kb, (1, fan_out), jnp.float32, -bound, bound)
    return w, b


def _init_head(key, in_dim, hidden_dim, num_atoms):
    keys = jax.random.split(key, 4)
    w1, b1 = _init_linear(keys[0], in_dim, hidden_dim)
    w2, b2 = _init_linear(keys[1], hidden_dim, hidden_dim)
    w3, b3 = _init_linear(keys[2], hidden_dim, hidden_dim)
    w4, b4 = _init_linear(keys[3], hidden_dim, num_atoms)
    return (w1, b1, w2, b2, w3, b3, w4, b4)


def _ref_head(x, params):
    w1, b1, w2, b2, w3, b3, w4, b4 = params
    mish = lambda v: v * jnp.tanh(jax.nn.softplus(v))
    h = mish(x @ w1 + b1)
    h = mish(h @ w2 + b2)
    h = mish(h @ w3 + b3)
    return jax.nn.softmax(h @ w4 + b4, axis=-1)


# --------------------------------------------------------------------------- #
# Main
# --------------------------------------------------------------------------- #
if __name__ == "__main__":
    batch = 8
    state_dim = 16
    action_dim = 8
    hidden_dim = 32
    num_atoms = 51

    key = jax.random.PRNGKey(0)
    k_state, k_action, k_q1, k_q2 = jax.random.split(key, 4)

    state = jax.random.normal(k_state, (batch, state_dim), jnp.float32)
    action = jax.random.normal(k_action, (batch, action_dim), jnp.float32)

    q1_params = _init_head(k_q1, state_dim + action_dim, hidden_dim, num_atoms)
    q2_params = _init_head(k_q2, state_dim + action_dim, hidden_dim, num_atoms)

    packed = pack_critic_params(q1_params, q2_params, batch)

    q1_dist, q2_dist = critic_forward(state, action, packed, num_atoms=num_atoms)
    jax.block_until_ready((q1_dist, q2_dist))

    # sanity: shapes, exact softmax normalization, agreement with pure-JAX reference
    assert q1_dist.shape == (batch, num_atoms)
    assert q2_dist.shape == (batch, num_atoms)
    assert jnp.allclose(jnp.sum(q1_dist, axis=-1), 1.0, atol=1e-4)
    assert jnp.allclose(jnp.sum(q2_dist, axis=-1), 1.0, atol=1e-4)

    x_ref = jnp.concatenate([state, action], axis=-1)
    q1_ref = _ref_head(x_ref, q1_params)
    q2_ref = _ref_head(x_ref, q2_params)
    assert jnp.allclose(q1_dist, q1_ref, atol=5e-3, rtol=5e-3)
    assert jnp.allclose(q2_dist, q2_ref, atol=5e-3, rtol=5e-3)

    # TODO(synk): q_min / min / compute_target_distribution are training-time
    # utilities outside forward(); not implemented as kernels.
    print("KERNEL_OK")
</pallas_src>

<mosaic_0001>
module attributes {stable_mosaic.version = 11 : i64} {
  func.func @_critic_kernel(%arg0: memref<8x32xf32, #tpu.memory_space<vmem>>, %arg1: memref<544x128xbf16, #tpu.memory_space<vmem>>, %arg2: memref<5x8x128xf32, #tpu.memory_space<vmem>>, %arg3: memref<2x8x128xf32, #tpu.memory_space<vmem>>) attributes {dimension_semantics = [], scalar_prefetch = 0 : i64, scratch_operands = 0 : i64, tpu.core_type = #tpu.core_type<tc>} {
    %c0 = arith.constant 0 : index
    %c0_0 = arith.constant 0 : index
    %0 = vector.load %arg0[%c0, %c0_0] : memref<8x32xf32, #tpu.memory_space<vmem>>, vector<8x32xf32>
    %1 = arith.truncf %0 : vector<8x32xf32> to vector<8x32xbf16>
    %c0_1 = arith.constant 0 : index
    %c0_2 = arith.constant 0 : index
    %2 = vector.load %arg1[%c0_1, %c0_2] : memref<544x128xbf16, #tpu.memory_space<vmem>>, vector<32x128xbf16>
    %cst = arith.constant dense<0.000000e+00> : vector<8x128xf32>
    %3 = tpu.matmul %1, %2, %cst {dimension_numbers = #tpu.dot_dimension_numbers<[1], [0], [0], [1], [0, 0, 1, 1], [], []>} : vector<8x32xbf16>, vector<32x128xbf16>, vector<8x128xf32> -> vector<8x128xf32>
    %c0_3 = arith.constant 0 : index
    %c0_4 = arith.constant 0 : index
    %c0_5 = arith.constant 0 : index
    %4 = vector.load %arg2[%c0_3, %c0_4, %c0_5] : memref<5x8x128xf32, #tpu.memory_space<vmem>>, vector<1x8x128xf32>
    %5 = vector.shape_cast %4 : vector<1x8x128xf32> to vector<8x128xf32>
    %6 = arith.addf %3, %5 : vector<8x128xf32>
    %cst_6 = arith.constant 2.000000e+01 : f32
    %7 = vector.broadcast %cst_6 : f32 to vector<8x128xf32>
    %8 = arith.minimumf %6, %7 : vector<8x128xf32>
    %9 = math.exp %8 : vector<8x128xf32>
    %cst_7 = arith.constant 2.000000e+00 : f32
    %10 = vector.broadcast %cst_7 : f32 to vector<8x128xf32>
    %11 = arith.addf %9, %10 : vector<8x128xf32>
    %12 = arith.mulf %9, %11 : vector<8x128xf32>
    %13 = arith.mulf %6, %12 : vector<8x128xf32>
    %cst_8 = arith.constant 2.000000e+00 : f32
    %14 = vector.broadcast %cst_8 : f32 to vector<8x128xf32>
    %15 = arith.addf %12, %14 : vector<8x128xf32>
    %16 = tpu.reciprocal %15 {approx = true} : vector<8x128xf32> -> vector<8x128xf32>
    %17 = arith.mulf %13, %16 : vector<8x128xf32>
    %18 = arith.truncf %17 : vector<8x128xf32> to vector<8x128xbf16>
    %c32 = arith.constant 32 : index
    %c0_9 = arith.constant 0 : index
    %19 = vector.load %arg1[%c32, %c0_9] : memref<544x128xbf16, #tpu.memory_space<vmem>>, vector<128x128xbf16>
    %cst_10 = arith.constant dense<0.000000e+00> : vector<8x128xf32>
    %20 = tpu.matmul %18, %19, %cst_10 {dimension_numbers = #tpu.dot_dimension_numbers<[1], [0], [0], [1], [0, 0, 1, 1], [], []>} : vector<8x128xbf16>, vector<128x128xbf16>, vector<8x128xf32> -> vector<8x128xf32>
    %c1 = arith.constant 1 : index
    %c0_11 = arith.constant 0 : index
    %c0_12 = arith.constant 0 : index
    %21 = vector.load %arg2[%c1, %c0_11, %c0_12] : memref<5x8x128xf32, #tpu.memory_space<vmem>>, vector<1x8x128xf32>
    %22 = vector.shape_cast %21 : vector<1x8x128xf32> to vector<8x128xf32>
    %23 = arith.addf %20, %22 : vector<8x128xf32>
    %cst_13 = arith.constant 2.000000e+01 : f32
    %24 = vector.broadcast %cst_13 : f32 to vector<8x128xf32>
    %25 = arith.minimumf %23, %24 : vector<8x128xf32>
    %26 = math.exp %25 : vector<8x128xf32>
    %cst_14 = arith.constant 2.000000e+00 : f32
    %27 = vector.broadcast %cst_14 : f32 to vector<8x128xf32>
    %28 = arith.addf %26, %27 : vector<8x128xf32>
    %29 = arith.mulf %26, %28 : vector<8x128xf32>
    %30 = arith.mulf %23, %29 : vector<8x128xf32>
    %cst_15 = arith.constant 2.000000e+00 : f32
    %31 = vector.broadcast %cst_15 : f32 to vector<8x128xf32>
    %32 = arith.addf %29, %31 : vector<8x128xf32>
    %33 = tpu.reciprocal %32 {approx = true} : vector<8x128xf32> -> vector<8x128xf32>
    %34 = arith.mulf %30, %33 : vector<8x128xf32>
    %35 = arith.truncf %34 : vector<8x128xf32> to vector<8x128xbf16>
    %c160 = arith.constant 160 : index
    %c0_16 = arith.constant 0 : index
    %36 = vector.load %arg1[%c160, %c0_16] : memref<544x128xbf16, #tpu.memory_space<vmem>>, vector<128x128xbf16>
    %cst_17 = arith.constant dense<0.000000e+00> : vector<8x128xf32>
    %37 = tpu.matmul %35, %36, %cst_17 {dimension_numbers = #tpu.dot_dimension_numbers<[1], [0], [0], [1], [0, 0, 1, 1], [], []>} : vector<8x128xbf16>, vector<128x128xbf16>, vector<8x128xf32> -> vector<8x128xf32>
    %c2 = arith.constant 2 : index
    %c0_18 = arith.constant 0 : index
    %c0_19 = arith.constant 0 : index
    %38 = vector.load %arg2[%c2, %c0_18, %c0_19] : memref<5x8x128xf32, #tpu.memory_space<vmem>>, vector<1x8x128xf32>
    %39 = vector.shape_cast %38 : vector<1x8x128xf32> to vector<8x128xf32>
    %40 = arith.addf %37, %39 : vector<8x128xf32>
    %cst_20 = arith.constant 2.000000e+01 : f32
    %41 = vector.broadcast %cst_20 : f32 to vector<8x128xf32>
    %42 = arith.minimumf %40, %41 : vector<8x128xf32>
    %43 = math.exp %42 : vector<8x128xf32>
    %cst_21 = arith.constant 2.000000e+00 : f32
    %44 = vector.broadcast %cst_21 : f32 to vector<8x128xf32>
    %45 = arith.addf %43, %44 : vector<8x128xf32>
    %46 = arith.mulf %43, %45 : vector<8x128xf32>
    %47 = arith.mulf %40, %46 : vector<8x128xf32>
    %cst_22 = arith.constant 2.000000e+00 : f32
    %48 = vector.broadcast %cst_22 : f32 to vector<8x128xf32>
    %49 = arith.addf %46, %48 : vector<8x128xf32>
    %50 = tpu.reciprocal %49 {approx = true} : vector<8x128xf32> -> vector<8x128xf32>
    %51 = arith.mulf %47, %50 : vector<8x128xf32>
    %52 = arith.truncf %51 : vector<8x128xf32> to vector<8x128xbf16>
    %c288 = arith.constant 288 : index
    %c0_23 = arith.constant 0 : index
    %53 = vector.load %arg1[%c288, %c0_23] : memref<544x128xbf16, #tpu.memory_space<vmem>>, vector<128x128xbf16>
    %cst_24 = arith.constant dense<0.000000e+00> : vector<8x128xf32>
    %54 = tpu.matmul %52, %53, %cst_24 {dimension_numbers = #tpu.dot_dimension_numbers<[1], [0], [0], [1], [0, 0, 1, 1], [], []>} : vector<8x128xbf16>, vector<128x128xbf16>, vector<8x128xf32> -> vector<8x128xf32>
    %c3 = arith.constant 3 : index
    %c0_25 = arith.constant 0 : index
    %c0_26 = arith.constant 0 : index
    %55 = vector.load %arg2[%c3, %c0_25, %c0_26] : memref<5x8x128xf32, #tpu.memory_space<vmem>>, vector<1x8x128xf32>
    %56 = vector.shape_cast %55 : vector<1x8x128xf32> to vector<8x128xf32>
    %57 = arith.addf %54, %56 : vector<8x128xf32>
    %c416 = arith.constant 416 : index
    %c0_27 = arith.constant 0 : index
    %58 = vector.load %arg1[%c416, %c0_27] : memref<544x128xbf16, #tpu.memory_space<vmem>>, vector<128x128xbf16>
    %cst_28 = arith.constant dense<0.000000e+00> : vector<8x128xf32>
    %59 = tpu.matmul %52, %58, %cst_28 {dimension_numbers = #tpu.dot_dimension_numbers<[1], [0], [0], [1], [0, 0, 1, 1], [], []>} : vector<8x128xbf16>, vector<128x128xbf16>, vector<8x128xf32> -> vector<8x128xf32>
    %c4 = arith.constant 4 : index
    %c0_29 = arith.constant 0 : index
    %c0_30 = arith.constant 0 : index
    %60 = vector.load %arg2[%c4, %c0_29, %c0_30] : memref<5x8x128xf32, #tpu.memory_space<vmem>>, vector<1x8x128xf32>
    %61 = vector.shape_cast %60 : vector<1x8x128xf32> to vector<8x128xf32>
    %62 = arith.addf %59, %61 : vector<8x128xf32>
    %cst_31 = arith.constant dense<0xFF800000> : vector<8xf32>
    %63 = vector.multi_reduction <maximumf>, %57, %cst_31 [1] : vector<8x128xf32> to vector<8xf32>
    %64 = vector.shape_cast %63 : vector<8xf32> to vector<8x1xf32>
    %65 = vector.broadcast %64 : vector<8x1xf32> to vector<8x128xf32>
    %66 = arith.subf %57, %65 : vector<8x128xf32>
    %67 = math.exp %66 : vector<8x128xf32>
    %cst_32 = arith.constant dense<0.000000e+00> : vector<8xf32>
    %68 = vector.multi_reduction <add>, %67, %cst_32 [1] : vector<8x128xf32> to vector<8xf32>
    %69 = vector.shape_cast %68 : vector<8xf32> to vector<8x1xf32>
    %70 = vector.broadcast %69 : vector<8x1xf32> to vector<8x128xf32>
    %71 = arith.divf %67, %70 : vector<8x128xf32>
    %c0_33 = arith.constant 0 : index
    %c0_34 = arith.constant 0 : index
    %c0_35 = arith.constant 0 : index
    %72 = vector.load %arg3[%c0_33, %c0_34, %c0_35] : memref<2x8x128xf32, #tpu.memory_space<vmem>>, vector<1x8x128xf32>
    %73 = vector.shape_cast %72 : vector<1x8x128xf32> to vector<8x128xf32>
    %74 = vector.shape_cast %71 : vector<8x128xf32> to vector<1x8x128xf32>
    tpu.vector_store %arg3[%c0_33, %c0_34, %c0_35], %74 {strides = array<i32>} : memref<2x8x128xf32, #tpu.memory_space<vmem>>, vector<1x8x128xf32>,
    %cst_36 = arith.constant dense<0xFF800000> : vector<8xf32>
    %75 = vector.multi_reduction <maximumf>, %62, %cst_36 [1] : vector<8x128xf32> to vector<8xf32>
    %76 = vector.shape_cast %75 : vector<8xf32> to vector<8x1xf32>
    %77 = vector.broadcast %76 : vector<8x1xf32> to vector<8x128xf32>
    %78 = arith.subf %62, %77 : vector<8x128xf32>
    %79 = math.exp %78 : vector<8x128xf32>
    %cst_37 = arith.constant dense<0.000000e+00> : vector<8xf32>
    %80 = vector.multi_reduction <add>, %79, %cst_37 [1] : vector<8x128xf32> to vector<8xf32>
    %81 = vector.shape_cast %80 : vector<8xf32> to vector<8x1xf32>
    %82 = vector.broadcast %81 : vector<8x1xf32> to vector<8x128xf32>
    %83 = arith.divf %79, %82 : vector<8x128xf32>
    %c1_38 = arith.constant 1 : index
    %c0_39 = arith.constant 0 : index
    %c0_40 = arith.constant 0 : index
    %84 = vector.load %arg3[%c1_38, %c0_39, %c0_40] : memref<2x8x128xf32, #tpu.memory_space<vmem>>, vector<1x8x128xf32>
    %85 = vector.shape_cast %84 : vector<1x8x128xf32> to vector<8x128xf32>
    %86 = vector.shape_cast %83 : vector<8x128xf32> to vector<1x8x128xf32>
    tpu.vector_store %arg3[%c1_38, %c0_39, %c0_40], %86 {strides = array<i32>} : memref<2x8x128xf32, #tpu.memory_space<vmem>>, vector<1x8x128xf32>,
    return
  }
}

</mosaic_0001>

<bundles_post_ra>
// kernel: critic_forward.1
= control target key start
LH: loop header
LB: loop body
LE: loop exit
PB: predicated region body
PF: predicated region fallthrough
CT: control target
= control target key end

     0   :  { %8 = vsyncpa [#allocation3], 0  ;;  %s773_s0 = inlined_call_operand.vmem [shape: f32[8,32], index: 0, kind: input, shape index: {}]   ;;  %s774_s1 = inlined_call_operand.hbm [shape: bf16[544,128], index: 1, kind: input, shape index: {}]   ;;  %s775_s2 = inlined_call_operand.hbm [shape: f32[5,8,128], index: 2, kind: input, shape index: {}]   ;;  %s776_s3 = inlined_call_operand.vmem [shape: f32[2,8,128], index: 3, kind: output, shape index: {}]  }
   0x1   :  { %s16_s14 = sshll.u32 %s774_s1, 4  ;;  %s17_s14 = int_to_ptr.hbm [resolvable:$true] %s16_s14 }
   0x2   :  { %9 = vsyncpa [#allocation5], 0  ;;  %s732_s15 = smov [#allocation2]   ;;  %s29_s19 = sshll.u32 %s775_s2, 4  ;;  %s30_s19 = int_to_ptr.hbm [resolvable:$true] %s29_s19 }
   0x3   :  { %s18_s16 = sshll.u32 %s732_s15, 4  ;;  %s733_s20 = smov 64   ;;  %s19_s16 = int_to_ptr.vmem [resolvable:$true] %s18_s16 }
   0x4   :  { %s734_s21 = smov 4   ;;  %s735_s22 = smov [#allocation4]  }
   0x5   :  { %24 = dma.hbm_to_vmem [thread:$0]  %s17_s14, 4352, %s19_s16, [#allocation3], %s733_s20, %s733_s20, %s734_s21  }
   0x6   :  { %s31_s23 = sshll.u32 %s735_s22, 4  ;;  %s736_s24 = smov 128   ;;  %s32_s23 = int_to_ptr.vmem [resolvable:$true] %s31_s23 }
   0x7   :  { %s737_s25 = smov 8  }
   0x8   :  { %37 = dma.hbm_to_vmem [thread:$0]  %s30_s19, 640, %s32_s23, [#allocation5], %s736_s24, %s736_s24, %s737_s25  }
   0x9   :  { %728 = dma.done.wait [#allocation3], 4352  }
   0xa   :  { %729 = vsyncadd [#allocation3], 4294962944 }
   0xb   :  { %730 = dma.done.wait [#allocation5], 640  }
   0xc   :  { %731 = vsyncadd [#allocation5], 4294966656  ;;  %v621_v0 = vld [vmem:[#allocation2 + $0x8] sm:$0xff]  ;;  %v620_v1 = vld [vmem:[#allocation2] sm:$0xff]  ;;  %vm66_vm0 = vcmask 261120  }
   0xd   :  { %76 = vmatpush.bf16.msra.mxu0 %v621_v0  ;;  %v47_v2 = vld [vmem:[%s773_s0] sm:$0xff]  ;;  %v629_v4 = vld [vmem:[#allocation2 + $0x48] sm:$0xff]  ;;  %v627_v6 = vld [vmem:[#allocation2 + $0x38] sm:$0xff] }
   0xe   :  { %v48_v3 = vpack.c.bf16 %v47_v2, %v47_v2  ;;  %159 = vmatpush.bf16.msra.mxu1 %v629_v4  ;;  %v628_v5 = vld [vmem:[#allocation2 + $0x40] sm:$0xff]  ;;  %v626_v7 = vld [vmem:[#allocation2 + $0x30] sm:$0xff]  ;;  %v625_v8 = vld [vmem:[#allocation2 + $0x28] sm:$0xff] }
   0xf   :  { %v624_v9 = vld [vmem:[#allocation2 + $0x20] sm:$0xff]  ;;  %v623_v10 = vld [vmem:[#allocation2 + $0x18] sm:$0xff]  ;;  %v622_v11 = vld [vmem:[#allocation2 + $0x10] sm:$0xff] }
  0x10   :  { %v53_v12 = vld [vmem:[#allocation4] sm:$0xff]  ;;  %v637_v26 = vld [vmem:[#allocation2 + $0x88] sm:$0xff]  ;;  %v636_v27 = vld [vmem:[#allocation2 + $0x80] sm:$0xff] }
  0x11   :  { %77 = vmatpush.bf16.msra.mxu0 %v620_v1  ;;  %248 = vmatpush.bf16.msra.mxu2 %v637_v26  ;;  %v635_v28 = vld [vmem:[#allocation2 + $0x78] sm:$0xff]  ;;  %v634_v29 = vld [vmem:[#allocation2 + $0x70] sm:$0xff]  ;;  %v633_v30 = vld [vmem:[#allocation2 + $0x68] sm:$0xff] }
  0x12   :  { %160 = vmatpush.bf16.msra.mxu1 %v628_v5  ;;  %v632_v31 = vld [vmem:[#allocation2 + $0x60] sm:$0xff]  ;;  %v631_v32 = vld [vmem:[#allocation2 + $0x58] sm:$0xff]  ;;  %v630_v33 = vld [vmem:[#allocation2 + $0x50] sm:$0xff] }
  0x13   :  { %v110_v34 = vld [vmem:[#allocation4 + $0x8] sm:$0xff]  ;;  %v645_v48 = vld [vmem:[#allocation2 + $0xc8] sm:$0xff]  ;;  %v644_v50 = vld [vmem:[#allocation2 + $0xc0] sm:$0xff] }
  0x14   :  { %490 = vmatmul.msk.bf16.vlgmr.msra.gmra.mxu0 %vm66_vm0, %v48_v3  ;;  %v653_v49 = vld [vmem:[#allocation2 + $0x108] sm:$0xff]  ;;  %337 = vmatpush.bf16.msra.mxu3 %v645_v48  ;;  %v652_v51 = vld [vmem:[#allocation2 + $0x100] sm:$0xff]  ;;  %v643_v52 = vld [vmem:[#allocation2 + $0xb8] sm:$0xff] }
  0x15   :  { %249 = vmatpush.bf16.msra.mxu2 %v636_v27  ;;  %416 = vmatpush.bf16.msrb.mxu0 %v653_v49  ;;  %v651_v53 = vld [vmem:[#allocation2 + $0xf8] sm:$0xff]  ;;  %v642_v54 = vld [vmem:[#allocation2 + $0xb0] sm:$0xff]  ;;  %v641_v56 = vld [vmem:[#allocation2 + $0xa8] sm:$0xff] }
  0x16   :  { %161 = vmatpush.bf16.msra.mxu1 %v627_v6  ;;  %v650_v55 = vld [vmem:[#allocation2 + $0xf0] sm:$0xff]  ;;  %v649_v57 = vld [vmem:[#allocation2 + $0xe8] sm:$0xff]  ;;  %v640_v58 = vld [vmem:[#allocation2 + $0xa0] sm:$0xff] }
  0x17   :  { %v648_v59 = vld [vmem:[#allocation2 + $0xe0] sm:$0xff]  ;;  %v639_v60 = vld [vmem:[#allocation2 + $0x98] sm:$0xff]  ;;  %v638_v62 = vld [vmem:[#allocation2 + $0x90] sm:$0xff] }
  0x18   :  { %338 = vmatpush.bf16.msra.mxu3 %v644_v50  ;;  %v647_v61 = vld [vmem:[#allocation2 + $0xd8] sm:$0xff]  ;;  %v646_v63 = vld [vmem:[#allocation2 + $0xd0] sm:$0xff]  ;;  %v199_v0 = vld [vmem:[#allocation4 + $0x10] sm:$0xff] }
  0x19   :  { %250 = vmatpush.bf16.msra.mxu2 %v635_v28  ;;  %417 = vmatpush.bf16.msrb.mxu0 %v652_v51 }
  0x1a   :  { %162 = vmatpush.bf16.msra.mxu1 %v626_v7 }
  0x1c   :  { %339 = vmatpush.bf16.msra.mxu3 %v643_v52 }
  0x1d   :  { %251 = vmatpush.bf16.msra.mxu2 %v634_v29  ;;  %418 = vmatpush.bf16.msrb.mxu0 %v651_v53 }
  0x1e   :  { %163 = vmatpush.bf16.msra.mxu1 %v625_v8 }
  0x20   :  { %340 = vmatpush.bf16.msra.mxu3 %v642_v54 }
  0x21   :  { %252 = vmatpush.bf16.msra.mxu2 %v633_v30  ;;  %419 = vmatpush.bf16.msrb.mxu0 %v650_v55 }
  0x22   :  { %164 = vmatpush.bf16.msra.mxu1 %v624_v9 }
  0x24   :  { %341 = vmatpush.bf16.msra.mxu3 %v641_v56 }
  0x25   :  { %253 = vmatpush.bf16.msra.mxu2 %v632_v31  ;;  %420 = vmatpush.bf16.msrb.mxu0 %v649_v57 }
  0x26   :  { %165 = vmatpush.bf16.msra.mxu1 %v623_v10 }
  0x28   :  { %342 = vmatpush.bf16.msra.mxu3 %v640_v58 }
  0x29   :  { %254 = vmatpush.bf16.msra.mxu2 %v631_v32  ;;  %421 = vmatpush.bf16.msrb.mxu0 %v648_v59 }
  0x2a   :  { %166 = vmatpush.bf16.msra.mxu1 %v622_v11 }
  0x2c   :  { %343 = vmatpush.bf16.msra.mxu3 %v639_v60 }
  0x2d   :  { %255 = vmatpush.bf16.msra.mxu2 %v630_v33  ;;  %422 = vmatpush.bf16.msrb.mxu0 %v647_v61 }
  0x30   :  { %344 = vmatpush.bf16.msra.mxu3 %v638_v62 }
  0x31   :  { %423 = vmatpush.bf16.msrb.mxu0 %v646_v63 }
  0x91   :  { %v79_v13 = vpop.f32.mrf.mxu0 }
  0x92   :  { %v80_v14 = vadd.f32 %v79_v13, %v53_v12 }
  0x94   :  { %v83_v15 = vmin.f32 %v80_v14, 20.0 }
  0x96   :  { %v84_v16 = vmul.f32 1.442695, %v83_v15  ;;  %v288_v15 = vld [vmem:[#allocation4 + $0x18] sm:$0xff] }
  0x98   :  { %660 = vpow2.f32 %v84_v16 }
  0x99   :  { %v81_v17 = vpop.f32.mrf.mxu0 }
  0x9e   :  { %v661_v18 = vpop.eup %660 }
  0x9f   :  { %v86_v19 = vadd.f32 2.0, %v661_v18 }
  0xa1   :  { %v87_v20 = vmul.f32 %v661_v18, %v86_v19  ;;  %v367_v19 = vld [vmem:[#allocation4 + $0x20] sm:$0xff] }
  0xa3   :  { %v89_v21 = vadd.f32 2.0, %v87_v20  ;;  %v88_v22 = vmul.f32 %v87_v20, %v80_v14 }
  0xa5   :  { %662 = vrcp.f32 %v89_v21 }
  0xab   :  { %v663_v23 = vpop.eup %662 }
  0xac   :  { %v91_v24 = vmul.f32 %v663_v23, %v88_v22 }
  0xae   :  { %v92_v25 = vpack.c.bf16 %v91_v24, %v91_v24 }
  0xb0   :  { %167 = vmatmul.bf16.vlgmr.msra.gmra.mxu1 %v92_v25 }
 0x12d   :  { %v168_v35 = vpop.f32.mrf.mxu1 }
 0x12e   :  { %v169_v36 = vadd.f32 %v168_v35, %v110_v34 }
 0x130   :  { %v172_v37 = vmin.f32 %v169_v36, 20.0 }
 0x132   :  { %v173_v38 = vmul.f32 1.442695, %v172_v37 }
 0x134   :  { %664 = vpow2.f32 %v173_v38 }
 0x135   :  { %v170_v39 = vpop.f32.mrf.mxu1 }
 0x13a   :  { %v665_v40 = vpop.eup %664 }
 0x13b   :  { %v175_v41 = vadd.f32 2.0, %v665_v40 }
 0x13d   :  { %v176_v42 = vmul.f32 %v665_v40, %v175_v41 }
 0x13f   :  { %v178_v43 = vadd.f32 2.0, %v176_v42  ;;  %v177_v44 = vmul.f32 %v176_v42, %v169_v36 }
 0x141   :  { %666 = vrcp.f32 %v178_v43 }
 0x147   :  { %v667_v45 = vpop.eup %666 }
 0x148   :  { %v180_v46 = vmul.f32 %v667_v45, %v177_v44 }
 0x14a   :  { %v181_v47 = vpack.c.bf16 %v180_v46, %v180_v46 }
 0x14c   :  { %256 = vmatmul.bf16.vlgmr.msra.gmra.mxu2 %v181_v47 }
 0x1cf   :  { %v257_v1 = vpop.f32.mrf.mxu2 }
 0x1d0   :  { %v258_v2 = vadd.f32 %v257_v1, %v199_v0 }
 0x1d2   :  { %v261_v3 = vmin.f32 %v258_v2, 20.0 }
 0x1d4   :  { %v262_v4 = vmul.f32 1.442695, %v261_v3 }
 0x1d6   :  { %668 = vpow2.f32 %v262_v4 }
 0x1d7   :  { %v259_v5 = vpop.f32.mrf.mxu2 }
 0x1dc   :  { %v669_v6 = vpop.eup %668 }
 0x1dd   :  { %v264_v7 = vadd.f32 2.0, %v669_v6 }
 0x1df   :  { %v265_v8 = vmul.f32 %v669_v6, %v264_v7 }
 0x1e1   :  { %v267_v9 = vadd.f32 2.0, %v265_v8  ;;  %v266_v10 = vmul.f32 %v265_v8, %v258_v2 }
 0x1e3   :  { %670 = vrcp.f32 %v267_v9 }
 0x1e9   :  { %v671_v11 = vpop.eup %670 }
 0x1ea   :  { %v269_v12 = vmul.f32 %v671_v11, %v266_v10 }
 0x1ec   :  { %v270_v13 = vpack.c.bf16 %v269_v12, %v269_v12 }
 0x1ee   :  { %345 = vmatmul.bf16.vlgmr.msra.gmra.mxu3 %v270_v13  ;;  %424 = vmatmul.bf16.vlgmr.msrb.gmra.mxu0 %v270_v13 }
 0x26b   :  { %v425_v14 = vpop.f32.mrf.mxu0 }
 0x26c   :  { %v426_v21 = vadd.f32 %v425_v14, %v367_v19 }
 0x271   :  { %v346_v16 = vpop.f32.mrf.mxu3 }
 0x272   :  { %v347_v17 = vadd.f32 %v346_v16, %v288_v15 }
 0x273   :  { %v427_v18 = vpop.f32.mrf.mxu0 }
 0x274   :  { %429 = vmax.xlane.f32.xlu0 %v347_v17 }
 0x279   :  { %v348_v20 = vpop.f32.mrf.mxu3 }
 0x27c   :  { %452 = vmax.xlane.f32.xlu0 %v426_v21 }
 0x2e7   :  { %v430_v22 = vpop.xlane.xlu0 %429 }
 0x2e8   :  { %v431_v23 = vsub.f32 %v347_v17, %v430_v22 }
 0x2ea   :  { %v432_v24 = vmul.f32 1.442695, %v431_v23 }
 0x2ec   :  { %672 = vpow2.f32 %v432_v24 }
 0x2ef   :  { %v453_v25 = vpop.xlane.xlu0 %452 }
 0x2f0   :  { %v454_v26 = vsub.f32 %v426_v21, %v453_v25 }
 0x2f2   :  { %v673_v27 = vpop.eup %672  ;;  %v455_v28 = vmul.f32 1.442695, %v454_v26 }
 0x2f3   :  { %434 = vadd.xlane.f32.xlu1 %v673_v27 }
 0x2f4   :  { %674 = vpow2.f32 %v455_v28 }
 0x2fa   :  { %v675_v29 = vpop.eup %674 }
 0x2fb   :  { %457 = vadd.xlane.f32.xlu1 %v675_v29 }
 0x366   :  { %v435_v30 = vpop.xlane.xlu1 %434 }
 0x367   :  { %676 = vrcp.f32 %v435_v30  ;;  %v447_v35 = vand.u32 2147483648, %v435_v30  ;;  %v445_v37 = vand.u32 2147483647, %v435_v30  ;;  %vm441_vm2 = vweird.f32 %v435_v30 }
 0x369   :  { %v448_v40 = vor.u32 1.1754944e-38, %v447_v35  ;;  %vm446_vm4 = vcmp.eq.f32.partialorder %v445_v37, 8.507059e+37 }
 0x36d   :  { %v677_v31 = vpop.eup %676 }
 0x36e   :  { %v437_v32 = vmul.f32 %v677_v31, %v435_v30  ;;  %v458_v33 = vpop.xlane.xlu1 %457  ;;  %vm442_vm1 = vweird.f32 %v677_v31 }
 0x36f   :  { %678 = vrcp.f32 %v458_v33  ;;  %vm443_vm3 = vmor %vm441_vm2, %vm442_vm1  ;;  %v470_v46 = vand.u32 2147483648, %v458_v33  ;;  %v468_v48 = vand.u32 2147483647, %v458_v33  ;;  %vm464_vm6 = vweird.f32 %v458_v33 }
 0x370   :  { %v438_v34 = vsub.f32 1.0, %v437_v32 }
 0x371   :  { %v471_v50 = vor.u32 1.1754944e-38, %v470_v46  ;;  %vm469_vm8 = vcmp.eq.f32.partialorder %v468_v48, 8.507059e+37 }
 0x372   :  { %v439_v36 = vmul.f32 %v677_v31, %v438_v34 }
 0x374   :  { %v440_v38 = vadd.f32 %v677_v31, %v439_v36 }
 0x375   :  { %v679_v39 = vpop.eup %678 }
 0x376   :  { %v444_v41 = vsel %vm443_vm3, %v677_v31, %v440_v38  ;;  %v460_v42 = vmul.f32 %v679_v39, %v458_v33  ;;  %vm465_vm5 = vweird.f32 %v679_v39 }
 0x377   :  { %v449_v43 = vsel %vm446_vm4, %v448_v40, %v444_v41  ;;  %vm466_vm7 = vmor %vm464_vm6, %vm465_vm5 }
 0x378   :  { %v450_v44 = vmul.f32 %v673_v27, %v449_v43  ;;  %v461_v45 = vsub.f32 1.0, %v460_v42 }
 0x37a   :  { %451 = vst [vmem:[%s776_s3] sm:$0xff] %v450_v44  ;;  %v462_v47 = vmul.f32 %v679_v39, %v461_v45 }
 0x37c   :  { %v463_v49 = vadd.f32 %v679_v39, %v462_v47 }
 0x37e   :  { %v467_v51 = vsel %vm466_vm7, %v679_v39, %v463_v49 }
 0x37f   :  { %v472_v52 = vsel %vm469_vm8, %v471_v50, %v467_v51 }
 0x380   :  { %v473_v53 = vmul.f32 %v675_v29, %v472_v52 }
 0x382   :  { %619 = vst [vmem:[%s776_s3 + $0x8] sm:$0xff] %v473_v53 }
 0x383   :  { %480 = vsyncpa [#allocation3], 1 }
 0x384   :  { %481 = vsyncpa [#allocation5], 1 }

</bundles_post_ra>
